<compile_context>
chip_gen: v7x
topology: tpu7x:2x2x1
jax: 0.10.0
libtpu: 0.0.40
codegen_flags: <defaults>
</compile_context>

<pallas_src>
import functools

import jax
import jax.numpy as jnp
from jax import lax
from jax.experimental import pallas as pl
from jax.experimental.pallas import tpu as pltpu


def _mhd_kernel(s_ref, ro_ref, out_ref):
    # s_ref : (H, tN, D)  L2-normalized LHS rows of this N tile (all heads)
    # ro_ref: (H, D, tM)  L2-normalized, K-major RHS of this M tile (all heads)
    # out_ref:(tN, tM)    max-over-heads cosine similarity
    head_num = s_ref.shape[0]

    acc = None
    for h in range(head_num):  # static unroll; head_num is small
        # (tN, D) x (D, tM) -> (tN, tM).  LHS is (M, K), RHS is (K, N): both
        # MXU-native, no transpose fixups.  f32 accumulation regardless of the
        # (possibly bf16) operand dtype.
        # Note: in the f32-operand path this relies on the default TPU matmul
        # precision (sufficient for the 1e-5 check below); the production path
        # uses bf16 operands where the question is moot.
        d = lax.dot_general(
            s_ref[h], ro_ref[h],
            dimension_numbers=(((1,), (0,)), ((), ())),
            preferred_element_type=jnp.float32,
        )
        acc = d if acc is None else jnp.maximum(acc, d)

    out_ref[...] = acc.astype(out_ref.dtype)


def _round_up(x, k):
    return (x + k - 1) // k * k


@functools.partial(
    jax.jit,
    static_argnames=("head_num", "head_dim", "tile_n", "tile_m",
                     "matmul_dtype", "out_dtype"))
def multi_head_distance(batch_s, batch_ro, head_num, head_dim,
                        tile_n=1024, tile_m=1024,
                        matmul_dtype=jnp.bfloat16, out_dtype=jnp.float32):
    """Pallas equivalent of MultiHeadDistance.forward (pool_method='maxpool').

    matmul_dtype=jnp.float32 reproduces the reference to ~1e-5; the default
    bfloat16 operands are ~1e-3 relative error but 2-3x faster (HBM-bound).
    """
    n = batch_s.shape[0]
    m = batch_ro.shape[0]
    assert batch_s.shape[-1] == head_num * head_dim
    assert batch_ro.shape[-1] == head_num * head_dim

    # ---- single fused input pass: reshape + normalize + cast + relayout + pad.
    s = batch_s.reshape(n, head_num, head_dim).astype(jnp.float32)
    ro = batch_ro.reshape(m, head_num, head_dim).astype(jnp.float32)
    # multiply-by-rsqrt == x / ||x||; zero-norm rows yield NaN exactly like the
    # PyTorch reference (no clamping).
    s = s * lax.rsqrt(jnp.sum(s * s, axis=-1, keepdims=True))
    ro = ro * lax.rsqrt(jnp.sum(ro * ro, axis=-1, keepdims=True))
    s = s.astype(matmul_dtype)
    ro = ro.astype(matmul_dtype)
    s = s.transpose(1, 0, 2)     # (H, N, D): per-head LHS is (rows, K)
    ro = ro.transpose(1, 2, 0)   # (H, D, M): per-head RHS is (K, cols), lane-dense

    # Tile sizes: sublane axis (N) multiple of 8; lane axis (M) multiple of 128
    # so output stores are unmasked and lane-dense.
    tn = min(tile_n, _round_up(n, 8))
    tm = min(tile_m, _round_up(m, 128))
    # v7x megacore: keep at least one parallel grid axis >= 2 when the problem
    # allows it (a fully collapsed grid serializes on one TensorCore).
    if _round_up(n, tn) == tn and _round_up(m, tm) == tm and n > 8:
        tn = _round_up(-(-n // 2), 8)
    n_pad = _round_up(n, tn)
    m_pad = _round_up(m, tm)

    if n_pad != n:
        s = jnp.pad(s, ((0, 0), (0, n_pad - n), (0, 0)))
    if m_pad != m:
        ro = jnp.pad(ro, ((0, 0), (0, 0), (0, m_pad - m)))

    grid = (n_pad // tn, m_pad // tm)

    # Advisory cost hint: s is fetched once (its block only changes with i),
    # ro is re-fetched once per i step, output written once.
    in_size = jnp.dtype(matmul_dtype).itemsize
    out_size = jnp.dtype(out_dtype).itemsize
    cost = pl.CostEstimate(
        flops=2 * head_num * n_pad * m_pad * head_dim,
        transcendentals=0,
        bytes_accessed=(n_pad * m_pad * out_size
                        + n_pad * head_num * head_dim * in_size
                        + grid[0] * m_pad * head_num * head_dim * in_size),
    )

    out = pl.pallas_call(
        _mhd_kernel,
        out_shape=jax.ShapeDtypeStruct((n_pad, m_pad), out_dtype),
        grid_spec=pltpu.PrefetchScalarGridSpec(
            num_scalar_prefetch=0,
            grid=grid,
            in_specs=[
                pl.BlockSpec((head_num, tn, head_dim), lambda i, j: (0, i, 0)),
                pl.BlockSpec((head_num, head_dim, tm), lambda i, j: (0, 0, j)),
            ],
            out_specs=pl.BlockSpec((tn, tm), lambda i, j: (i, j)),
        ),
        compiler_params=pltpu.CompilerParams(
            # Both tile axes are independent -> shardable across TCs on v7x.
            dimension_semantics=("parallel", "parallel"),
            # 1024x1024 tiles need ~20-30 MiB (out double-buffer + f32 acc/d
            # temps + inputs): above the default scoped limit (16/32 MiB) but
            # safely inside v7x's 64 MiB physical VMEM.
            vmem_limit_bytes=48 * 1024 * 1024,
        ),
        cost_estimate=cost,
    )(s, ro)

    return out[:n, :m]


def _reference(batch_s, batch_ro, head_num, head_dim):
    # Pure-JAX reference mirroring the PyTorch forward.
    n = batch_s.shape[0]
    m = batch_ro.shape[0]
    s = batch_s.reshape(n, head_num, head_dim)
    r = batch_ro.reshape(m, head_num, head_dim)
    s = s / jnp.linalg.norm(s, axis=-1, keepdims=True)
    r = r / jnp.linalg.norm(r, axis=-1, keepdims=True)
    dist = jnp.einsum("nhd,mhd->nmh", s, r)   # permute/matmul/permute chain
    return jnp.max(dist, axis=-1)             # MaxPool1d(head_num) + squeeze


if __name__ == "__main__":
    head_num = 4
    head_dim = 32
    hidden = head_num * head_dim  # 128

    key = jax.random.PRNGKey(0)

    # Case 1: tiny shapes, exact f32 path (single tile, padded M lane-dense).
    N, M = 8, 16
    k_s, k_ro = jax.random.split(key)
    batch_s = jax.random.normal(k_s, (N, hidden), dtype=jnp.float32)
    batch_ro = jax.random.normal(k_ro, (M, hidden), dtype=jnp.float32)

    out = multi_head_distance(batch_s, batch_ro, head_num, head_dim,
                              matmul_dtype=jnp.float32)
    out = jax.block_until_ready(out)
    ref = _reference(batch_s, batch_ro, head_num, head_dim)
    assert out.shape == (N, M)
    assert jnp.allclose(out, ref, atol=1e-5, rtol=1e-5)

    # Case 2: multi-tile grid + padding path with small tiles, production
    # bf16-operand path (relaxed tolerance: operands rounded to bf16).
    N2, M2 = 72, 150
    k_s2, k_ro2 = jax.random.split(jax.random.PRNGKey(1))
    batch_s2 = jax.random.normal(k_s2, (N2, hidden), dtype=jnp.float32)
    batch_ro2 = jax.random.normal(k_ro2, (M2, hidden), dtype=jnp.float32)

    out2 = multi_head_distance(batch_s2, batch_ro2, head_num, head_dim,
                               tile_n=32, tile_m=128)
    out2 = jax.block_until_ready(out2)
    ref2 = _reference(batch_s2, batch_ro2, head_num, head_dim)
    assert out2.shape == (N2, M2)
    assert jnp.allclose(out2, ref2, atol=1e-2, rtol=1e-2)

    # Case 3: bf16 output option (halves the dominant HBM stream).
    out3 = multi_head_distance(batch_s2, batch_ro2, head_num, head_dim,
                               tile_n=32, tile_m=128, out_dtype=jnp.bfloat16)
    out3 = jax.block_until_ready(out3)
    assert out3.dtype == jnp.bfloat16
    assert jnp.allclose(out3.astype(jnp.float32), ref2, atol=2e-2, rtol=2e-2)

    print("KERNEL_OK")
</pallas_src>

<mosaic_0001>
module attributes {stable_mosaic.version = 11 : i64} {
  func.func @_mhd_kernel(%arg0: i32, %arg1: i32, %arg2: memref<4x8x32xf32, #tpu.memory_space<vmem>>, %arg3: memref<4x32x128xf32, #tpu.memory_space<vmem>>, %arg4: memref<8x128xf32, #tpu.memory_space<vmem>>) attributes {dimension_semantics = [#tpu.dimension_semantics<parallel>, #tpu.dimension_semantics<parallel>], iteration_bounds = array<i64: 1, 1>, scalar_prefetch = 0 : i64, scratch_operands = 0 : i64, tpu.core_type = #tpu.core_type<tc>, window_params = [{transform_indices = @transform_0, window_bounds = array<i64: 4, 8, 32>}, {transform_indices = @transform_1, window_bounds = array<i64: 4, 32, 128>}, {transform_indices = @transform_2, window_bounds = array<i64: 8, 128>}]} {
    %c0 = arith.constant 0 : index
    %c0_0 = arith.constant 0 : index
    %c0_1 = arith.constant 0 : index
    %0 = vector.load %arg2[%c0, %c0_0, %c0_1] : memref<4x8x32xf32, #tpu.memory_space<vmem>>, vector<1x8x32xf32>
    %1 = vector.shape_cast %0 : vector<1x8x32xf32> to vector<8x32xf32>
    %c0_2 = arith.constant 0 : index
    %c0_3 = arith.constant 0 : index
    %c0_4 = arith.constant 0 : index
    %2 = vector.load %arg3[%c0_2, %c0_3, %c0_4] : memref<4x32x128xf32, #tpu.memory_space<vmem>>, vector<1x32x128xf32>
    %3 = vector.shape_cast %2 : vector<1x32x128xf32> to vector<32x128xf32>
    %cst = arith.constant dense<0.000000e+00> : vector<8x128xf32>
    %4 = tpu.matmul %1, %3, %cst {dimension_numbers = #tpu.dot_dimension_numbers<[1], [0], [0], [1], [0, 0, 1, 1], [], []>} : vector<8x32xf32>, vector<32x128xf32>, vector<8x128xf32> -> vector<8x128xf32>
    %c1 = arith.constant 1 : index
    %c0_5 = arith.constant 0 : index
    %c0_6 = arith.constant 0 : index
    %5 = vector.load %arg2[%c1, %c0_5, %c0_6] : memref<4x8x32xf32, #tpu.memory_space<vmem>>, vector<1x8x32xf32>
    %6 = vector.shape_cast %5 : vector<1x8x32xf32> to vector<8x32xf32>
    %c1_7 = arith.constant 1 : index
    %c0_8 = arith.constant 0 : index
    %c0_9 = arith.constant 0 : index
    %7 = vector.load %arg3[%c1_7, %c0_8, %c0_9] : memref<4x32x128xf32, #tpu.memory_space<vmem>>, vector<1x32x128xf32>
    %8 = vector.shape_cast %7 : vector<1x32x128xf32> to vector<32x128xf32>
    %cst_10 = arith.constant dense<0.000000e+00> : vector<8x128xf32>
    %9 = tpu.matmul %6, %8, %cst_10 {dimension_numbers = #tpu.dot_dimension_numbers<[1], [0], [0], [1], [0, 0, 1, 1], [], []>} : vector<8x32xf32>, vector<32x128xf32>, vector<8x128xf32> -> vector<8x128xf32>
    %10 = arith.maximumf %4, %9 : vector<8x128xf32>
    %c2 = arith.constant 2 : index
    %c0_11 = arith.constant 0 : index
    %c0_12 = arith.constant 0 : index
    %11 = vector.load %arg2[%c2, %c0_11, %c0_12] : memref<4x8x32xf32, #tpu.memory_space<vmem>>, vector<1x8x32xf32>
    %12 = vector.shape_cast %11 : vector<1x8x32xf32> to vector<8x32xf32>
    %c2_13 = arith.constant 2 : index
    %c0_14 = arith.constant 0 : index
    %c0_15 = arith.constant 0 : index
    %13 = vector.load %arg3[%c2_13, %c0_14, %c0_15] : memref<4x32x128xf32, #tpu.memory_space<vmem>>, vector<1x32x128xf32>
    %14 = vector.shape_cast %13 : vector<1x32x128xf32> to vector<32x128xf32>
    %cst_16 = arith.constant dense<0.000000e+00> : vector<8x128xf32>
    %15 = tpu.matmul %12, %14, %cst_16 {dimension_numbers = #tpu.dot_dimension_numbers<[1], [0], [0], [1], [0, 0, 1, 1], [], []>} : vector<8x32xf32>, vector<32x128xf32>, vector<8x128xf32> -> vector<8x128xf32>
    %16 = arith.maximumf %10, %15 : vector<8x128xf32>
    %c3 = arith.constant 3 : index
    %c0_17 = arith.constant 0 : index
    %c0_18 = arith.constant 0 : index
    %17 = vector.load %arg2[%c3, %c0_17, %c0_18] : memref<4x8x32xf32, #tpu.memory_space<vmem>>, vector<1x8x32xf32>
    %18 = vector.shape_cast %17 : vector<1x8x32xf32> to vector<8x32xf32>
    %c3_19 = arith.constant 3 : index
    %c0_20 = arith.constant 0 : index
    %c0_21 = arith.constant 0 : index
    %19 = vector.load %arg3[%c3_19, %c0_20, %c0_21] : memref<4x32x128xf32, #tpu.memory_space<vmem>>, vector<1x32x128xf32>
    %20 = vector.shape_cast %19 : vector<1x32x128xf32> to vector<32x128xf32>
    %cst_22 = arith.constant dense<0.000000e+00> : vector<8x128xf32>
    %21 = tpu.matmul %18, %20, %cst_22 {dimension_numbers = #tpu.dot_dimension_numbers<[1], [0], [0], [1], [0, 0, 1, 1], [], []>} : vector<8x32xf32>, vector<32x128xf32>, vector<8x128xf32> -> vector<8x128xf32>
    %22 = arith.maximumf %16, %21 : vector<8x128xf32>
    %c0_23 = arith.constant 0 : index
    %c0_24 = arith.constant 0 : index
    %23 = vector.load %arg4[%c0_23, %c0_24] : memref<8x128xf32, #tpu.memory_space<vmem>>, vector<8x128xf32>
    tpu.vector_store %arg4[%c0_23, %c0_24], %22 {strides = array<i32>} : memref<8x128xf32, #tpu.memory_space<vmem>>, vector<8x128xf32>,
    return
  }
  func.func @transform_0(%arg0: i32, %arg1: i32) -> (i32, i32, i32) {
    %c0_i32 = arith.constant 0 : i32
    %c0_i32_0 = arith.constant 0 : i32
    %c0_i32_1 = arith.constant 0 : i32
    return %c0_i32, %arg0, %c0_i32_0 : i32, i32, i32
  }
  func.func @transform_1(%arg0: i32, %arg1: i32) -> (i32, i32, i32) {
    %c0_i32 = arith.constant 0 : i32
    %c0_i32_0 = arith.constant 0 : i32
    %c0_i32_1 = arith.constant 0 : i32
    return %c0_i32, %c0_i32_0, %arg1 : i32, i32, i32
  }
  func.func @transform_2(%arg0: i32, %arg1: i32) -> (i32, i32) {
    %c0_i32 = arith.constant 0 : i32
    return %arg0, %arg1 : i32, i32
  }
}

</mosaic_0001>

<bundles_post_ra>
// kernel: multi_head_distance.1
= control target key start
LH: loop header
LB: loop body
LE: loop exit
PB: predicated region body
PF: predicated region fallthrough
CT: control target
= control target key end

     0   :  { %v484_v3 = vmov 0.0|0.0   ;;  %vm485_vm0 = vmmov 0   ;;  %v486_v11 = vmov 0.0   ;;  %s583_s0 = inlined_call_operand.vmem [shape: f32[4,8,32], index: 0, kind: input, shape index: {}]   ;;  %s584_s1 = inlined_call_operand.vmem [shape: f32[4,32,128], index: 1, kind: input, shape index: {}]   ;;  %s585_s2 = inlined_call_operand.hbm [shape: f32[8,128], index: 2, kind: output, shape index: {}]  }
   0x1   :  { %v13_v0 = vld [vmem:[%s584_s1] sm:$0xff]  ;;  %v14_v1 = vld [vmem:[%s584_s1 + $0x8] sm:$0xff]  ;;  %432 = vmatprep.subr.bf16.mxu0 %v484_v3  ;;  %438 = vmatprep.subr.bf16.mxu1 %v484_v3  ;;  %v15_v6 = vld [vmem:[%s584_s1 + $0x10] sm:$0xff] }
   0x2   :  { %v351_v2 = vld [vmem:[%s584_s1 + $0x20] sm:$0xff]  ;;  %v433_v4 = vpack.c.bf16 %v14_v1, %v13_v0  ;;  %v352_v5 = vld [vmem:[%s584_s1 + $0x28] sm:$0xff]  ;;  %v16_v7 = vld [vmem:[%s584_s1 + $0x18] sm:$0xff]  ;;  %396 = vmatprep.mubr.msk.f32.mxu0 %vm485_vm0, %v486_v11  ;;  %407 = vmatprep.mubr.msk.f32.mxu1 %vm485_vm0, %v486_v11 }
   0x3   :  { %v439_v8 = vpack.c.bf16 %v352_v5, %v351_v2  ;;  %v353_v9 = vld [vmem:[%s584_s1 + $0x30] sm:$0xff]  ;;  %v354_v10 = vld [vmem:[%s584_s1 + $0x38] sm:$0xff]  ;;  %v436_v12 = vpack.c.bf16 %v16_v7, %v15_v6  ;;  %v357_v14 = vld [vmem:[%s584_s1 + $0x40] sm:$0xff] }
   0x4   :  { %434 = vmatpush3.bf16.msra.mxu0 %v433_v4  ;;  %v442_v13 = vpack.c.bf16 %v354_v10, %v353_v9  ;;  %v358_v15 = vld [vmem:[%s584_s1 + $0x48] sm:$0xff]  ;;  %v363_v16 = vld [vmem:[%s584_s1 + $0x60] sm:$0xff] }
   0x5   :  { %440 = vmatpush3.bf16.msra.mxu1 %v439_v8  ;;  %435 = vmatprep.subr.bf16.mxu0 %v484_v3  ;;  %v364_v17 = vld [vmem:[%s584_s1 + $0x68] sm:$0xff] }
   0x6   :  { %441 = vmatprep.subr.bf16.mxu1 %v484_v3 }
   0x7   :  { %7 = vsyncpa [#allocation3], 0  ;;  %v12_v18 = vld [vmem:[%s583_s0] sm:$0xff]  ;;  %vm17_vm1 = vcmask 261120   ;;  %v445_v19 = vpack.c.bf16 %v358_v15, %v357_v14  ;;  %v350_v20 = vld [vmem:[%s583_s0 + $0x8] sm:$0xff]  ;;  %v451_v21 = vpack.c.bf16 %v364_v17, %v363_v16  ;;  %s487_s20 = smov [#allocation2]  }
   0x8   :  { %437 = vmatpush3.bf16.msra.mxu0 %v436_v12  ;;  %v359_v22 = vld [vmem:[%s584_s1 + $0x50] sm:$0xff]  ;;  %v360_v23 = vld [vmem:[%s584_s1 + $0x58] sm:$0xff]  ;;  %s341_s21 = sshll.u32 %s487_s20, 4  ;;  %s342_s21 = int_to_ptr.vmem [resolvable:$true] %s341_s21 }
   0x9   :  { %443 = vmatpush3.bf16.msra.mxu1 %v442_v13  ;;  %444 = vmatprep.subr.bf16.mxu0 %v484_v3  ;;  %v365_v24 = vld [vmem:[%s584_s1 + $0x70] sm:$0xff]  ;;  %v366_v25 = vld [vmem:[%s584_s1 + $0x78] sm:$0xff]  ;;  %v448_v26 = vpack.c.bf16 %v360_v23, %v359_v22  ;;  %p465_p1 = scmp.lt.s32.totalorder %s342_s21, %s342_s21 }
   0xa   :  { %450 = vmatprep.subr.bf16.mxu1 %v484_v3  ;;  %v454_v27 = vpack.c.bf16 %v366_v25, %v365_v24  ;;  %v356_v28 = vld [vmem:[%s583_s0 + $0x10] sm:$0xff]  ;;  %v362_v29 = vld [vmem:[%s583_s0 + $0x18] sm:$0xff]  ;;  %s460_s0 = scalar_lea.vmem %s342_s21, 128 }
   0xb   :  { %397 = vmatmul.mubr.msk.f32.vlgmr.msra.gmra.mrb[0].mxu0 %vm17_vm1, %v12_v18  ;;  %p461_p0 = scmp.ne.s32.totalorder %s342_s21, %s460_s0  ;;  %p466_p2 = scmp.lt.s32.totalorder %s460_s0, %s460_s0 }
   0xc   :  { %408 = vmatmul.mubr.msk.f32.vlgmr.msra.gmra.mrb[0].mxu1 %vm17_vm1, %v350_v20  ;;  %446 = vmatpush3.bf16.msra.mxu0 %v445_v19 }
   0xd   :  { %452 = vmatpush3.bf16.msra.mxu1 %v451_v21  ;;  %447 = vmatprep.subr.bf16.mxu0 %v484_v3  ;;  %p467_p3 = por %p466_p2, %p465_p1 }
   0xe   :  { %453 = vmatprep.subr.bf16.mxu1 %v484_v3  ;;  %418 = vmatprep.mubr.msk.f32.mxu0 %vm485_vm0, %v486_v11 }
   0xf   :  { %429 = vmatprep.mubr.msk.f32.mxu1 %vm485_vm0, %v486_v11  ;;  %p468_p4 = pnand %p467_p3, %p461_p0 }
  0x10   :  { %449 = vmatpush3.bf16.msra.mxu0 %v448_v26 }
  0x11   :  { %455 = vmatpush3.bf16.msra.mxu1 %v454_v27 }
  0x13   :  { %419 = vmatmul.mubr.msk.f32.vlgmr.msra.gmra.mrb[2].mxu0 %vm17_vm1, %v356_v28 }
  0x14   :  { %430 = vmatmul.mubr.msk.f32.vlgmr.msra.gmra.mrb[2].mxu1 %vm17_vm1, %v362_v29 }
  0xde   :  { %v87_v30 = vpop.f32.mrb[0].mxu0 }
  0xdf   :  { %v398_v31 = vpop.f32.mrb[1].mxu0  ;;  %v167_v32 = vpop.f32.mrb[0].mxu1 }
  0xe0   :  { %v171_v33 = vmax.f32 %v87_v30, %v167_v32  ;;  %v409_v34 = vpop.f32.mrb[1].mxu1 }
  0xe6   :  { %v248_v35 = vpop.f32.mrb[2].mxu0 }
  0xe7   :  { %v252_v36 = vmax.f32 %v171_v33, %v248_v35  ;;  %v420_v37 = vpop.f32.mrb[3].mxu0  ;;  %v329_v38 = vpop.f32.mrb[2].mxu1 }
  0xe8   :  { %v431_v39 = vpop.f32.mrb[3].mxu1 }
  0xe9   :  { %v333_v40 = vmax.f32 %v252_v36, %v329_v38 }
  0xeb   :  { %334 = vst [vmem:[#allocation2] sm:$0xff] %v333_v40 }
  0xec   :  { %471 = shalt.err (!%p468_p4)
}
  0xed   :  { %s472_s24 = scalar_lea.hbm %s585_s2, 128 }
  0xee   :  { %p473_p5 = scmp.ne.s32.totalorder %s585_s2, %s472_s24  ;;  %p476_p6 = scmp.lt.u32.totalorder %s472_s24, %s585_s2 }
  0xf0   :  { %p478_p7 = pnand %p476_p6, %p473_p5 }
  0xf2   :  { %481 = shalt.err (!%p478_p7)
}
  0xf3   :  { %344 = dma.vmem_to_hbm [thread:$0]  %s342_s21, 128, %s585_s2, [#allocation3]  }
  0xf4   :  { %482 = dma.done.wait [#allocation3], 128  }
  0xf5   :  { %483 = vsyncadd [#allocation3], 4294967168 }
  0xf6   :  { %348 = vsyncpa [#allocation3], 1 }

</bundles_post_ra>
